<compile_context>
chip_gen: v7x
topology: tpu7x:2x2x1
jax: 0.10.0
libtpu: 0.0.40
codegen_flags: <defaults>
</compile_context>

<pallas_src>
import jax
import jax.numpy as jnp
from jax import lax
from jax.experimental import pallas as pl
from jax.experimental.pallas import tpu as pltpu  # noqa: F401  (TPU backend assumed)

_LANE = 128
_SUBLANE = 8


def _round_up(x, k):
    return ((x + k - 1) // k) * k


# ----------------------------------------------------------------------------
# Single fused kernel: KKT math + time-factor losses
#   gres = G @ z - h
#   objc = 0.5 * z^T Q z
#   J    = [[Q,  G^T diag(lam), A^T],
#           [G,  diag(gres),    0  ],
#           [A,  0,             0  ]]     (emitted in a lane-padded layout)
#   obj1 = sum(times[:seg]) / seg
#   pad  = MSE(times[seg:], 0)            (0 if seg == total)
# seg / total / sizes are Python ints baked in at trace time.
# ----------------------------------------------------------------------------
def _make_kkt_losses_kernel(n, m, p, seg, total, col1_off):
    N = n + m + p

    def kernel(qga_ref, gtlam_at_ref, h_ref, zrow_ref, zcol_ref, t_ref,
               jmat_ref, scal_ref):
        z_row = zrow_ref[...]                 # (1, n)
        z_col = zcol_ref[...]                 # (n, 1)
        h = h_ref[...]                        # (m, 1)

        Q = qga_ref[0:n, :]                   # (n, n)   view of stacked [Q; G; A]
        Gm = qga_ref[n:n + m, :]              # (m, n)

        # Fused matvec work on the VPU + lane reduce (no MXU round-trip for
        # 1-lane matmuls on a latency-bound kernel).
        Qz = jnp.sum(Q * z_row, axis=1, keepdims=True)          # (n, 1)
        objc = 0.5 * jnp.sum(z_col * Qz)                        # 0.5 z^T Q z
        gres = jnp.sum(Gm * z_row, axis=1, keepdims=True) - h   # (m, 1) = G z - h

        # ---- Jacobian assembly: direct block stores into the zero-filled,
        #      lane-tile-aligned padded output (no in-kernel concatenates). ----
        jmat_ref[...] = jnp.zeros_like(jmat_ref)
        jmat_ref[0:N, 0:n] = qga_ref[...]                        # [Q; G; A]
        jmat_ref[0:n, col1_off:col1_off + m + p] = gtlam_at_ref[...]  # [G^T diag(lam), A^T]
        ridx = lax.broadcasted_iota(jnp.int32, (m, m), 0)
        cidx = lax.broadcasted_iota(jnp.int32, (m, m), 1)
        jmat_ref[n:n + m, col1_off:col1_off + m] = jnp.where(
            ridx == cidx, gres, jnp.float32(0.0))                # diag(G z - h)

        # ---- time-factor losses (fused here; avoids a second pallas_call) ----
        t = t_ref[...]                                           # (1, total)
        idx = lax.broadcasted_iota(jnp.int32, (1, total), 1)
        in_seg = idx < seg
        obj1 = jnp.sum(jnp.where(in_seg, t, 0.0)) / float(seg)
        zero_segments = total - seg
        if zero_segments != 0:
            pad = jnp.sum(jnp.where(in_seg, 0.0, t * t)) / float(zero_segments)
        else:
            pad = jnp.float32(0.0)

        # Pack the three scalars into one lane-dense row: [objc, obj1, pad, 0...]
        lane = lax.broadcasted_iota(jnp.int32, scal_ref.shape, 1)
        scal_ref[...] = (jnp.where(lane == 0, objc, 0.0)
                         + jnp.where(lane == 1, obj1, 0.0)
                         + jnp.where(lane == 2, pad, 0.0))

    return kernel


# ----------------------------------------------------------------------------
# Wrapper (glue: parameter stacking, transposes, padded-J compaction, scalars)
# ----------------------------------------------------------------------------
def osqp_layer_forward(parameters, times, seg, path_length, z, lam, nu):
    """parameters = (Q, A_eq, b_eq, G1, h1, G2, h2) like qp_traj.params.

    Returns (z, curr_obj1_val, None, curr_objc_val, curr_padding_loss, J).
    J is the KKT Jacobian used by the PyTorch backward hook.
    """
    Q, A_eq, b_eq, G1, h1, G2, h2 = parameters
    f32 = jnp.float32
    Qf = Q.astype(f32)
    Af = A_eq.astype(f32)
    G = jnp.vstack([G1, G2]).astype(f32)           # params[3] = vstack(G1, G2)
    h = jnp.concatenate([h1, h2]).astype(f32)      # params[4] = hstack(h1, h2)
    zf = z.reshape(-1).astype(f32)
    lamf = lam.reshape(-1).astype(f32)

    n = Qf.shape[0]
    p = Af.shape[0]
    m = G.shape[0]
    N = n + m + p
    seg = int(seg)
    total = int(times.shape[0])
    if seg <= 0:
        raise ValueError("seg must be >= 1 (curr_obj1_val divides by seg)")

    # Lane-padded J layout: column-block 0 ([Q;G;A], n lanes) at lane 0;
    # column-blocks 1+2 ([G^T diag(lam), A^T] / [diag(g), 0] / [0, 0], m+p lanes)
    # at the next 128-lane tile boundary. All in-kernel stores are tile-aligned.
    if n > _LANE or (m + p) > _LANE:
        # TODO(synk): tile J with a 2-D grid (and vmem_limit_bytes) for large QPs.
        raise NotImplementedError("osqp_layer_forward: n and m+p must be <= 128")
    col1_off = _round_up(max(n, 1), _LANE)
    ncols = col1_off + _round_up(max(m + p, 1), _LANE)
    nrows = _round_up(N, _SUBLANE)

    # Transposes / stacking hoisted out of the kernel (free XLA layout work).
    qga = jnp.concatenate([Qf, G, Af], axis=0)                       # (N, n)
    gtlam_at = jnp.concatenate([G.T * lamf[None, :], Af.T], axis=1)  # (n, m+p)

    # TODO(synk): the OSQP sparse QP solve (prob.setup / prob.solve) has no Pallas
    # equivalent; z / lam / nu stand in for res.x, res.y[eq_num:], res.y[:eq_num].
    # TODO(synk): if many QP instances are processed per step, batch them on a
    # leading "parallel" grid axis so v7x's two TensorCores both get work.

    jmat_pad, scal = pl.pallas_call(
        _make_kkt_losses_kernel(n, m, p, seg, total, col1_off),
        out_shape=[
            jax.ShapeDtypeStruct((nrows, ncols), f32),   # padded J (lane-dense)
            jax.ShapeDtypeStruct((1, _LANE), f32),       # [objc, obj1, pad, ...]
        ],
    )(
        qga,
        gtlam_at,
        h.reshape(m, 1),
        zf.reshape(1, n),
        zf.reshape(n, 1),
        times.reshape(1, total).astype(f32),
    )

    # Compact the lane-padded Jacobian to the dense (N, N) matrix:
    # columns [0:n) from lane-tile 0, columns [n:N) from lane-tile 1.
    J = jnp.concatenate(
        [jmat_pad[:N, 0:n], jmat_pad[:N, col1_off:col1_off + m + p]], axis=1)

    curr_objc_val = scal[0, 0] / path_length
    curr_obj1_val = scal[0, 1]
    curr_padding_loss = scal[0, 2]

    # y = hstack(z, lam, nu); the forward only uses y[:var_num] == z, so the
    # dead concat+slice is removed and z is returned directly.
    z_out = zf

    # curr_objt_val is None on the "solved" path of the reference module.
    return (z_out, curr_obj1_val, None, curr_objc_val, curr_padding_loss, J)


if __name__ == "__main__":
    key = jax.random.PRNGKey(0)
    keys = jax.random.split(key, 12)

    # Small QP-like problem sizes
    n, p, m1, m2 = 32, 8, 12, 4      # var_num, eq_num, ineq blocks
    seq = 5                          # length of init_time_factor (Times)

    L = jax.random.normal(keys[0], (n, n), jnp.float32)
    Q = L @ L.T + float(n) * jnp.eye(n, dtype=jnp.float32)   # PSD cost matrix
    A_eq = jax.random.normal(keys[1], (p, n), jnp.float32)
    b_eq = jax.random.normal(keys[2], (p,), jnp.float32)
    G1 = jax.random.normal(keys[3], (m1, n), jnp.float32)
    h1 = jax.random.normal(keys[4], (m1,), jnp.float32)
    G2 = jax.random.normal(keys[5], (m2, n), jnp.float32)
    h2 = jax.random.normal(keys[6], (m2,), jnp.float32)
    times = jax.random.normal(keys[7], (seq,), jnp.float32)

    # Stand-in OSQP solver outputs (res.x, res.y split)
    z = jax.random.normal(keys[8], (n,), jnp.float32)
    lam = jax.random.normal(keys[9], (m1 + m2,), jnp.float32)
    nu = jax.random.normal(keys[10], (p,), jnp.float32)

    # Module parameters from __init__ (unused in forward, kept for parity)
    s0 = jax.random.normal(keys[11], (5,), jnp.float32)
    pos_s0 = jax.random.normal(jax.random.PRNGKey(1), (2000,), jnp.float32)

    seg = 3
    path_length = 7.5

    outs = osqp_layer_forward(
        (Q, A_eq, b_eq, G1, h1, G2, h2), times, seg, path_length, z, lam, nu
    )
    jax.block_until_ready([o for o in outs if o is not None])
    print("KERNEL_OK")
</pallas_src>

<mosaic_0001>
module attributes {stable_mosaic.version = 11 : i64} {
  func.func @kernel(%arg0: memref<56x32xf32, #tpu.memory_space<vmem>>, %arg1: memref<32x24xf32, #tpu.memory_space<vmem>>, %arg2: memref<16x1xf32, #tpu.memory_space<vmem>>, %arg3: memref<1x32xf32, #tpu.memory_space<vmem>>, %arg4: memref<32x1xf32, #tpu.memory_space<vmem>>, %arg5: memref<1x5xf32, #tpu.memory_space<vmem>>, %arg6: memref<56x256xf32, #tpu.memory_space<vmem>>, %arg7: memref<1x128xf32, #tpu.memory_space<vmem>>) attributes {dimension_semantics = [], scalar_prefetch = 0 : i64, scratch_operands = 0 : i64, tpu.core_type = #tpu.core_type<tc>} {
    %c0 = arith.constant 0 : index
    %c0_0 = arith.constant 0 : index
    %0 = vector.load %arg3[%c0, %c0_0] : memref<1x32xf32, #tpu.memory_space<vmem>>, vector<1x32xf32>
    %c0_1 = arith.constant 0 : index
    %c0_2 = arith.constant 0 : index
    %1 = vector.load %arg4[%c0_1, %c0_2] : memref<32x1xf32, #tpu.memory_space<vmem>>, vector<32x1xf32>
    %c0_3 = arith.constant 0 : index
    %c0_4 = arith.constant 0 : index
    %2 = vector.load %arg2[%c0_3, %c0_4] : memref<16x1xf32, #tpu.memory_space<vmem>>, vector<16x1xf32>
    %c0_5 = arith.constant 0 : index
    %c0_6 = arith.constant 0 : index
    %3 = vector.load %arg0[%c0_5, %c0_6] : memref<56x32xf32, #tpu.memory_space<vmem>>, vector<32x32xf32>
    %c32 = arith.constant 32 : index
    %c0_7 = arith.constant 0 : index
    %4 = vector.load %arg0[%c32, %c0_7] : memref<56x32xf32, #tpu.memory_space<vmem>>, vector<16x32xf32>
    %5 = vector.broadcast %0 : vector<1x32xf32> to vector<32x32xf32>
    %6 = arith.mulf %3, %5 : vector<32x32xf32>
    %cst = arith.constant dense<0.000000e+00> : vector<32xf32>
    %7 = vector.multi_reduction <add>, %6, %cst [1] : vector<32x32xf32> to vector<32xf32>
    %8 = vector.shape_cast %7 : vector<32xf32> to vector<32x1xf32>
    %9 = arith.mulf %1, %8 : vector<32x1xf32>
    %10 = vector.shape_cast %9 : vector<32x1xf32> to vector<1x32x1xf32>
    %cst_8 = arith.constant dense<0.000000e+00> : vector<1xf32>
    %11 = vector.multi_reduction <add>, %10, %cst_8 [1, 2] : vector<1x32x1xf32> to vector<1xf32>
    %12 = vector.shape_cast %11 : vector<1xf32> to vector<1x1x1xf32>
    %13 = vector.extract %12[0, 0, 0] : f32 from vector<1x1x1xf32>
    %cst_9 = arith.constant 5.000000e-01 : f32
    %14 = arith.mulf %cst_9, %13 : f32
    %15 = vector.broadcast %0 : vector<1x32xf32> to vector<16x32xf32>
    %16 = arith.mulf %4, %15 : vector<16x32xf32>
    %cst_10 = arith.constant dense<0.000000e+00> : vector<16xf32>
    %17 = vector.multi_reduction <add>, %16, %cst_10 [1] : vector<16x32xf32> to vector<16xf32>
    %18 = vector.shape_cast %17 : vector<16xf32> to vector<16x1xf32>
    %19 = arith.subf %18, %2 : vector<16x1xf32>
    %cst_11 = arith.constant 0.000000e+00 : f32
    %20 = vector.broadcast %cst_11 : f32 to vector<56x256xf32>
    %c0_12 = arith.constant 0 : index
    %c0_13 = arith.constant 0 : index
    %21 = vector.load %arg6[%c0_12, %c0_13] : memref<56x256xf32, #tpu.memory_space<vmem>>, vector<56x256xf32>
    tpu.vector_store %arg6[%c0_12, %c0_13], %20 {strides = array<i32>} : memref<56x256xf32, #tpu.memory_space<vmem>>, vector<56x256xf32>,
    %c0_14 = arith.constant 0 : index
    %c0_15 = arith.constant 0 : index
    %22 = vector.load %arg0[%c0_14, %c0_15] : memref<56x32xf32, #tpu.memory_space<vmem>>, vector<56x32xf32>
    %c0_16 = arith.constant 0 : index
    %c0_17 = arith.constant 0 : index
    %23 = vector.load %arg6[%c0_16, %c0_17] : memref<56x256xf32, #tpu.memory_space<vmem>>, vector<56x32xf32>
    tpu.vector_store %arg6[%c0_16, %c0_17], %22 {strides = array<i32>} : memref<56x256xf32, #tpu.memory_space<vmem>>, vector<56x32xf32>,
    %c0_18 = arith.constant 0 : index
    %c0_19 = arith.constant 0 : index
    %24 = vector.load %arg1[%c0_18, %c0_19] : memref<32x24xf32, #tpu.memory_space<vmem>>, vector<32x24xf32>
    %c0_20 = arith.constant 0 : index
    %c128 = arith.constant 128 : index
    %25 = vector.load %arg6[%c0_20, %c128] : memref<56x256xf32, #tpu.memory_space<vmem>>, vector<32x24xf32>
    tpu.vector_store %arg6[%c0_20, %c128], %24 {strides = array<i32>} : memref<56x256xf32, #tpu.memory_space<vmem>>, vector<32x24xf32>,
    %26 = tpu.iota {dimensions = array<i32: 0>} : vector<16x16xi32>
    %27 = tpu.iota {dimensions = array<i32: 1>} : vector<16x16xi32>
    %28 = arith.cmpi eq, %26, %27 : vector<16x16xi32>
    %cst_21 = arith.constant 0.000000e+00 : f32
    %29 = vector.shape_cast %19 : vector<16x1xf32> to vector<16x1xf32>
    %30 = vector.broadcast %29 : vector<16x1xf32> to vector<16x16xf32>
    %31 = vector.broadcast %cst_21 : f32 to vector<16x16xf32>
    %32 = arith.select %28, %30, %31 : vector<16x16xi1>, vector<16x16xf32>
    %c32_22 = arith.constant 32 : index
    %c128_23 = arith.constant 128 : index
    %33 = vector.load %arg6[%c32_22, %c128_23] : memref<56x256xf32, #tpu.memory_space<vmem>>, vector<16x16xf32>
    tpu.vector_store %arg6[%c32_22, %c128_23], %32 {strides = array<i32>} : memref<56x256xf32, #tpu.memory_space<vmem>>, vector<16x16xf32>,
    %c0_24 = arith.constant 0 : index
    %c0_25 = arith.constant 0 : index
    %34 = vector.load %arg5[%c0_24, %c0_25] : memref<1x5xf32, #tpu.memory_space<vmem>>, vector<1x5xf32>
    %35 = tpu.iota {dimensions = array<i32: 1>} : vector<1x5xi32>
    %c3_i32 = arith.constant 3 : i32
    %36 = vector.broadcast %c3_i32 : i32 to vector<1x5xi32>
    %37 = arith.cmpi slt, %35, %36 : vector<1x5xi32>
    %cst_26 = arith.constant 0.000000e+00 : f32
    %38 = vector.broadcast %cst_26 : f32 to vector<1x5xf32>
    %39 = arith.select %37, %34, %38 : vector<1x5xi1>, vector<1x5xf32>
    %40 = vector.shape_cast %39 : vector<1x5xf32> to vector<1x1x5xf32>
    %cst_27 = arith.constant dense<0.000000e+00> : vector<1xf32>
    %41 = vector.multi_reduction <add>, %40, %cst_27 [1, 2] : vector<1x1x5xf32> to vector<1xf32>
    %42 = vector.shape_cast %41 : vector<1xf32> to vector<1x1x1xf32>
    %43 = vector.extract %42[0, 0, 0] : f32 from vector<1x1x1xf32>
    %cst_28 = arith.constant 3.000000e+00 : f32
    %44 = arith.divf %43, %cst_28 : f32
    %45 = arith.mulf %34, %34 : vector<1x5xf32>
    %cst_29 = arith.constant 0.000000e+00 : f32
    %46 = vector.broadcast %cst_29 : f32 to vector<1x5xf32>
    %47 = arith.select %37, %46, %45 : vector<1x5xi1>, vector<1x5xf32>
    %48 = vector.shape_cast %47 : vector<1x5xf32> to vector<1x1x5xf32>
    %cst_30 = arith.constant dense<0.000000e+00> : vector<1xf32>
    %49 = vector.multi_reduction <add>, %48, %cst_30 [1, 2] : vector<1x1x5xf32> to vector<1xf32>
    %50 = vector.shape_cast %49 : vector<1xf32> to vector<1x1x1xf32>
    %51 = vector.extract %50[0, 0, 0] : f32 from vector<1x1x1xf32>
    %cst_31 = arith.constant 2.000000e+00 : f32
    %52 = arith.divf %51, %cst_31 : f32
    %53 = tpu.iota {dimensions = array<i32: 1>} : vector<1x128xi32>
    %c0_i32 = arith.constant 0 : i32
    %54 = vector.broadcast %c0_i32 : i32 to vector<1x128xi32>
    %55 = arith.cmpi eq, %53, %54 : vector<1x128xi32>
    %cst_32 = arith.constant 0.000000e+00 : f32
    %56 = vector.broadcast %14 : f32 to vector<1x128xf32>
    %57 = vector.broadcast %cst_32 : f32 to vector<1x128xf32>
    %58 = arith.select %55, %56, %57 : vector<1x128xi1>, vector<1x128xf32>
    %c1_i32 = arith.constant 1 : i32
    %59 = vector.broadcast %c1_i32 : i32 to vector<1x128xi32>
    %60 = arith.cmpi eq, %53, %59 : vector<1x128xi32>
    %cst_33 = arith.constant 0.000000e+00 : f32
    %61 = vector.broadcast %44 : f32 to vector<1x128xf32>
    %62 = vector.broadcast %cst_33 : f32 to vector<1x128xf32>
    %63 = arith.select %60, %61, %62 : vector<1x128xi1>, vector<1x128xf32>
    %64 = arith.addf %58, %63 : vector<1x128xf32>
    %c2_i32 = arith.constant 2 : i32
    %65 = vector.broadcast %c2_i32 : i32 to vector<1x128xi32>
    %66 = arith.cmpi eq, %53, %65 : vector<1x128xi32>
    %cst_34 = arith.constant 0.000000e+00 : f32
    %67 = vector.broadcast %52 : f32 to vector<1x128xf32>
    %68 = vector.broadcast %cst_34 : f32 to vector<1x128xf32>
    %69 = arith.select %66, %67, %68 : vector<1x128xi1>, vector<1x128xf32>
    %70 = arith.addf %64, %69 : vector<1x128xf32>
    %c0_35 = arith.constant 0 : index
    %c0_36 = arith.constant 0 : index
    %71 = vector.load %arg7[%c0_35, %c0_36] : memref<1x128xf32, #tpu.memory_space<vmem>>, vector<1x128xf32>
    tpu.vector_store %arg7[%c0_35, %c0_36], %70 {strides = array<i32>} : memref<1x128xf32, #tpu.memory_space<vmem>>, vector<1x128xf32>,
    return
  }
}

</mosaic_0001>

<bundles_post_ra>
// kernel: tpu_custom_call.1
= control target key start
LH: loop header
LB: loop body
LE: loop exit
PB: predicated region body
PF: predicated region fallthrough
CT: control target
= control target key end

     0   :  { %13 = vsyncpa [#allocation3], 0  ;;  %vm50_vm0 = vcmask 261120   ;;  %v132_v3 = vlaneseq  ;;  %s471_s0 = inlined_call_operand.vmem [shape: f32[56,32], index: 0, kind: input, shape index: {}]   ;;  %s472_s1 = inlined_call_operand.vmem [shape: f32[32,24], index: 1, kind: input, shape index: {}]   ;;  %s473_s2 = inlined_call_operand.vmem [shape: f32[16,1], index: 2, kind: input, shape index: {}]   ;;  %s474_s3 = inlined_call_operand.vmem [shape: f32[1,32], index: 3, kind: input, shape index: {}]   ;;  %s475_s4 = inlined_call_operand.vmem [shape: f32[32,1], index: 4, kind: input, shape index: {}]   ;;  %s476_s5 = inlined_call_operand.vmem [shape: f32[1,5], index: 5, kind: input, shape index: {}]   ;;  %s477_s6 = inlined_call_operand.hbm [shape: f32[56,256], index: 6, kind: output, shape index: {0}]   ;;  %s478_s7 = inlined_call_operand.hbm [shape: f32[1,128], index: 7, kind: output, shape index: {1}]  }
   0x1   :  { %v228_v0 = vld [vmem:[%s474_s3] ss:$0 sm:$0xff]  ;;  %v348_v2 = vld [vmem:[%s471_s0 + $0x10] sm:$0xff]  ;;  %v355_v6 = vld [vmem:[%s471_s0 + $0x8] sm:$0xff] }
   0x2   :  { %v343_v1 = vld [vmem:[%s471_s0] sm:$0xff]  ;;  %v48_v5 = vmul.f32 %v228_v0, %v348_v2  ;;  %v360_v7 = vld [vmem:[%s471_s0 + $0x18] sm:$0xff]  ;;  %v47_v8 = vmul.f32 %v228_v0, %v355_v6  ;;  %v365_v10 = vand.u32 127, %v132_v3 }
   0x3   :  { %v46_v4 = vmul.f32 %v228_v0, %v343_v1  ;;  %v49_v9 = vmul.f32 %v228_v0, %v360_v7  ;;  %v370_v11 = vld [vmem:[%s471_s0 + $0x20] sm:$0xff] }
   0x4   :  { %v57_v13 = vsel %vm50_vm0, %v48_v5, 0.0  ;;  %v154_v14 = vld [vmem:[%s476_s5] sm:$0x1] }
   0x5   :  { %v51_v12 = vsel %vm50_vm0, %v46_v4, 0.0 }
   0x6   :  { %14 = vsyncpa [#allocation5], 0  ;;  %52 = vadd.xlane.f32.xlu0 %v51_v12  ;;  %58 = vadd.xlane.f32.xlu1 %v57_v13  ;;  %vm155_vm1 = vcmp.lt.s32.totalorder %v365_v10, 3  ;;  %v54_v15 = vsel %vm50_vm0, %v47_v8, 0.0  ;;  %v60_v16 = vsel %vm50_vm0, %v49_v9, 0.0  ;;  %v85_v17 = vmul.f32 %v228_v0, %v370_v11  ;;  %v386_v19 = vld [vmem:[%s471_s0 + $0x28] sm:$0xff] }
   0x7   :  { %v156_v18 = vsel %vm155_vm1, %v154_v14, 0.0  ;;  %vm157_vm2 = vcmask 32768   ;;  %v86_v21 = vmul.f32 %v228_v0, %v386_v19  ;;  %v171_v24 = vmul.f32 %v154_v14, %v154_v14  ;;  %v28_v28 = vld [vmem:[%s475_s4] sm:$0xff]  ;;  %v30_v31 = vld [vmem:[%s475_s4 + $0x10] sm:$0xff]  ;;  %v29_v32 = vld [vmem:[%s475_s4 + $0x8] sm:$0xff] }
   0x8   :  { %v158_v20 = vsel %vm157_vm2, %v156_v18, 0.0  ;;  %v87_v22 = vsel %vm50_vm0, %v85_v17, 0.0  ;;  %v291_v27 = vmov 0   ;;  %v31_v33 = vld [vmem:[%s475_s4 + $0x18] sm:$0xff]  ;;  %vm67_vm3 = vcmask 7168   ;;  %v32_v40 = vld [vmem:[%s473_s2] sm:$0xff] }
   0x9   :  { %v90_v23 = vsel %vm50_vm0, %v86_v21, 0.0  ;;  %v172_v25 = vsel %vm155_vm1, 0.0, %v171_v24  ;;  %242 = vset.pattern.permute.xlu0 %v291_v27  ;;  %241 = vset.pattern.permute.xlu1 %v291_v27  ;;  %v33_v51 = vld [vmem:[%s473_s2 + $0x8] sm:$0xff]  ;;  %v115_v54 = vld [vmem:[%s471_s0 + $0x30] sm:$0xff]  ;;  %v123_v55 = vld [vmem:[%s472_s1] sm:$0xff]  ;;  %v292_v57 = vmov 0.0  }
   0xa   :  { %55 = vadd.xlane.f32.xlu0 %v54_v15  ;;  %61 = vadd.xlane.f32.xlu1 %v60_v16  ;;  %v173_v26 = vsel %vm157_vm2, %v172_v25, 0.0  ;;  %v124_v56 = vld [vmem:[%s472_s1 + $0x8] sm:$0xff]  ;;  %104 = vst [vmem:[#allocation2 + $0x48] sm:$0xff] %v292_v57  ;;  %95 = vst [vmem:[#allocation2] sm:$0xff] %v292_v57  ;;  %v125_v58 = vld [vmem:[%s472_s1 + $0x10] sm:$0xff]  ;;  %vm127_vm4 = vcmask 195584  }
   0xb   :  { %96 = vst [vmem:[#allocation2 + $0x8] sm:$0xff] %v292_v57  ;;  %97 = vst [vmem:[#allocation2 + $0x10] sm:$0xff] %v292_v57  ;;  %v126_v59 = vld [vmem:[%s472_s1 + $0x18] sm:$0xff]  ;;  %v133_v60 = vshrl.u32 %v132_v3, 7  ;;  %vm151_vm6 = vcmask 130048   ;;  %s293_s1 = smov [#allocation2]  }
   0xc   :  { %98 = vst [vmem:[#allocation2 + $0x18] sm:$0xff] %v292_v57  ;;  %99 = vst [vmem:[#allocation2 + $0x20] sm:$0xff] %v292_v57  ;;  %s203_s10 = sshll.u32 %s293_s1, 4  ;;  %s204_s10 = int_to_ptr.vmem [resolvable:$true] %s203_s10 }
   0xd   :  { %100 = vst [vmem:[#allocation2 + $0x28] sm:$0xff] %v292_v57  ;;  %101 = vst [vmem:[#allocation2 + $0x30] sm:$0xff] %v292_v57  ;;  %vm137_vm5 = vcmp.eq.s32.totalorder %v133_v60, %v365_v10  ;;  %s243_s11 = scalar_lea.vmem %s204_s10, 1792  ;;  %p248_p1 = scmp.lt.s32.totalorder %s204_s10, %s204_s10 }
   0xe   :  { %159 = vadd.xlane.f32.xlu1 %v158_v20  ;;  %88 = vadd.xlane.f32.xlu0 %v87_v22  ;;  %102 = vst [vmem:[#allocation2 + $0x38] sm:$0xff] %v292_v57  ;;  %103 = vst [vmem:[#allocation2 + $0x40] sm:$0xff] %v292_v57  ;;  %p244_p0 = scmp.ne.s32.totalorder %s204_s10, %s243_s11  ;;  %p249_p2 = scmp.lt.s32.totalorder %s243_s11, %s243_s11 }
   0xf   :  { %105 = vst [vmem:[#allocation2 + $0x50] sm:$0xff] %v292_v57  ;;  %106 = vst [vmem:[#allocation2 + $0x58] sm:$0xff] %v292_v57 }
  0x10   :  { %107 = vst [vmem:[#allocation2 + $0x60] sm:$0xff] %v292_v57  ;;  %108 = vst [vmem:[#allocation2 + $0x68] sm:$0xff] %v292_v57  ;;  %p250_p3 = por %p249_p2, %p248_p1 }
  0x11   :  { %116 = vst.msk [vmem:[#allocation2] sm:$0xff] %vm50_vm0, %v343_v1  ;;  %117 = vst.msk [vmem:[#allocation2 + $0x10] sm:$0xff] %vm50_vm0, %v355_v6 }
  0x12   :  { %91 = vadd.xlane.f32.xlu1 %v90_v23  ;;  %118 = vst.msk [vmem:[#allocation2 + $0x20] sm:$0xff] %vm50_vm0, %v348_v2  ;;  %119 = vst.msk [vmem:[#allocation2 + $0x30] sm:$0xff] %vm50_vm0, %v360_v7  ;;  %p251_p4 = pnand %p250_p3, %p244_p0 }
  0x13   :  { %120 = vst.msk [vmem:[#allocation2 + $0x40] sm:$0xff] %vm50_vm0, %v370_v11  ;;  %121 = vst.msk [vmem:[#allocation2 + $0x50] sm:$0xff] %vm50_vm0, %v386_v19  ;;  %v134_v11 = vadd.s32 8, %v133_v60 }
  0x14   :  { %122 = vst.msk [vmem:[#allocation2 + $0x60] sm:$0xff] %vm50_vm0, %v115_v54 }
  0x15   :  { %128 = vst.msk [vmem:[#allocation2 + $0x8] sm:$0xff] %vm127_vm4, %v123_v55  ;;  %129 = vst.msk [vmem:[#allocation2 + $0x18] sm:$0xff] %vm127_vm4, %v124_v56  ;;  %vm138_vm7 = vcmp.eq.s32.totalorder %v134_v11, %v365_v10 }
  0x16   :  { %130 = vst.msk [vmem:[#allocation2 + $0x28] sm:$0xff] %vm127_vm4, %v125_v58  ;;  %131 = vst.msk [vmem:[#allocation2 + $0x38] sm:$0xff] %vm127_vm4, %v126_v59 }
  0x93   :  { %v53_v29 = vpop.xlane.xlu0 %52  ;;  %v59_v30 = vpop.xlane.xlu1 %58 }
  0x94   :  { %v63_v34 = vmul.f32 %v53_v29, %v28_v28  ;;  %v65_v37 = vmul.f32 %v59_v30, %v30_v31 }
  0x96   :  { %v68_v41 = vsel %vm67_vm3, %v63_v34, 0.0  ;;  %v71_v45 = vsel %vm67_vm3, %v65_v37, 0.0 }
  0x97   :  { %v56_v35 = vpop.xlane.xlu0 %55  ;;  %v62_v36 = vpop.xlane.xlu1 %61 }
  0x98   :  { %v64_v38 = vmul.f32 %v56_v35, %v29_v32  ;;  %v66_v39 = vmul.f32 %v62_v36, %v31_v33 }
  0x9a   :  { %v69_v42 = vsel %vm67_vm3, %v64_v38, 0.0  ;;  %v73_v46 = vsel %vm67_vm3, %v66_v39, 0.0 }
  0x9b   :  { %v70_v43 = vadd.f32 %v69_v42, %v68_v41  ;;  %v89_v44 = vpop.xlane.xlu0 %88  ;;  %v160_v50 = vpop.xlane.xlu1 %159 }
  0x9c   :  { %v93_v47 = vsub.f32 %v89_v44, %v32_v40  ;;  %v161_v63 = vrot.slane %v160_v50, 4 }
  0x9d   :  { %v72_v48 = vadd.f32 %v71_v45, %v70_v43 }
  0x9e   :  { %141 = vperm.xlu1 %241, %v93_v47   ;;  %v162_v0 = vadd.f32 %v161_v63, %v160_v50 }
  0x9f   :  { %v74_v49 = vadd.f32 %v73_v46, %v72_v48  ;;  %v92_v52 = vpop.xlane.xlu1 %91 }
  0xa0   :  { %v94_v53 = vsub.f32 %v92_v52, %v33_v51  ;;  %v163_v1 = vrot.slane %v162_v0, 2 }
  0xa1   :  { %75 = vadd.xlane.f32.xlu0 %v74_v49 }
  0xa2   :  { %v164_v7 = vadd.f32 %v163_v1, %v162_v0 }
  0xa4   :  { %v165_v13 = vrot.slane %v164_v7, 1 }
  0xa5   :  { %174 = vadd.xlane.f32.xlu0 %v173_v26 }
  0xa6   :  { %v166_v18 = vadd.f32 %v165_v13, %v164_v7 }
  0xbb   :  { %146 = vperm.xlu0 %242, %v94_v53  }
 0x11d   :  { %v142_v61 = vpop.permute.xlu1 %141 }
 0x11e   :  { %v149_v62 = vsel %vm137_vm5, %v142_v61, 0.0 }
 0x11f   :  { %152 = vst.msk [vmem:[#allocation2 + $0x48] sm:$0xff] %vm151_vm6, %v149_v62 }
 0x12e   :  { %v76_v2 = vpop.xlane.xlu0 %75 }
 0x12f   :  { %v77_v4 = vrot.slane %v76_v2, 4 }
 0x131   :  { %v78_v5 = vadd.f32 %v77_v4, %v76_v2 }
 0x132   :  { %v175_v6 = vpop.xlane.xlu0 %174 }
 0x133   :  { %v79_v8 = vrot.slane %v78_v5, 2  ;;  %v176_v9 = vrot.slane %v175_v6, 4 }
 0x135   :  { %v177_v12 = vadd.f32 %v176_v9, %v175_v6  ;;  %v80_v3 = vadd.f32 %v79_v8, %v78_v5 }
 0x137   :  { %v178_v14 = vrot.slane %v177_v12, 2  ;;  %v81_v15 = vrot.slane %v80_v3, 1 }
 0x139   :  { %v82_v16 = vadd.f32 %v81_v15, %v80_v3  ;;  %v179_v17 = vadd.f32 %v178_v14, %v177_v12 }
 0x13a   :  { %v147_v19 = vpop.permute.xlu0 %146 }
 0x13b   :  { %229 = vpush %v82_v16  ;;  %v180_v20 = vrot.slane %v179_v17, 1  ;;  %v150_v21 = vsel %vm138_vm7, %v147_v19, 0.0 }
 0x13c   :  { %231 = vpush %v166_v18 }
 0x13d   :  { %153 = vst.msk [vmem:[#allocation2 + $0x58] sm:$0xff] %vm151_vm6, %v150_v21  ;;  %v181_v22 = vadd.f32 %v180_v20, %v179_v17 }
 0x13e   :  { %254 = shalt.err (!%p251_p4)
}
 0x13f   :  { %s255_s14 = scalar_lea.hbm %s477_s6, 1792 }
 0x140   :  { %p256_p5 = scmp.ne.s32.totalorder %s477_s6, %s255_s14  ;;  %p259_p6 = scmp.lt.u32.totalorder %s255_s14, %s477_s6 }
 0x142   :  { %p261_p7 = pnand %p259_p6, %p256_p5 }
 0x144   :  { %264 = shalt.err (!%p261_p7)
}
 0x145   :  { %s294_s18 = smov 256   ;;  %s295_s19 = smov 16   ;;  %233 = vpush %v181_v22  ;;  %vm186_vm8 = vcmp.eq.s32.totalorder %v365_v10, 0  ;;  %vm189_vm9 = vcmp.eq.s32.totalorder %v365_v10, 1  ;;  %vm193_vm10 = vcmp.eq.s32.totalorder %v365_v10, 2 }
 0x146   :  { %209 = dma.vmem_to_hbm [thread:$0]  %s204_s10, 1792, %s477_s6, [#allocation3], %s294_s18, %s294_s18, %s295_s19  }
 0x147   :  { %s296_s27 = smov [#allocation4]  }
 0x148   :  { %s216_s28 = sshll.u32 %s296_s27, 4  ;;  %s217_s28 = int_to_ptr.vmem [resolvable:$true] %s216_s28 }
 0x149   :  { %s265_s6 = scalar_lea.vmem %s217_s28, 16  ;;  %s269_s29 = scalar_lea.vmem %s217_s28, 32 }
 0x14a   :  { %p266_p8 = scmp.ne.s32.totalorder %s217_s28, %s265_s6  ;;  %p270_p9 = scmp.lt.s32.totalorder %s217_s28, %s217_s28 }
 0x14b   :  { %p271_p10 = scmp.lt.s32.totalorder %s269_s29, %s265_s6 }
 0x14d   :  { %p272_p11 = por %p271_p10, %p270_p9 }
 0x14f   :  { %p273_p12 = pnand %p272_p11, %p266_p8 }
 0x16c   :  { %s230_s22 = spop %229 }
 0x16d   :  { %s84_s23 = smul.f32 0.5, %s230_s22  ;;  %s232_s24 = spop %231 }
 0x16e   :  { %s170_s4 = smul.f32 0.33333334, %s232_s24 }
 0x16f   :  { %v187_v23 = vstv %s84_s23 }
 0x170   :  { %v188_v24 = vsel %vm186_vm8, %v187_v23, 0.0  ;;  %v190_v25 = vstv %s170_s4 }
 0x171   :  { %v191_v26 = vsel %vm189_vm9, %v190_v25, 0.0 }
 0x172   :  { %v192_v27 = vadd.f32 %v191_v26, %v188_v24 }
 0x176   :  { %s234_s25 = spop %233 }
 0x177   :  { %s185_s26 = smul.f32 0.5, %s234_s25 }
 0x179   :  { %v194_v28 = vstv %s185_s26 }
 0x17a   :  { %v195_v29 = vsel %vm193_vm10, %v194_v28, 0.0 }
 0x17b   :  { %v196_v30 = vadd.f32 %v195_v29, %v192_v27 }
 0x17d   :  { %197 = vst [vmem:[#allocation4] sm:$0x1] %v196_v30 }
 0x17e   :  { %276 = shalt.err (!%p273_p12)
}
 0x17f   :  { %s277_s0 = scalar_lea.hbm %s478_s7, 16 }
 0x180   :  { %p278_p13 = scmp.ne.s32.totalorder %s478_s7, %s277_s0  ;;  %p281_p0 = scmp.lt.u32.totalorder %s277_s0, %s478_s7 }
 0x182   :  { %p283_p1 = pnand %p281_p0, %p278_p13 }
 0x184   :  { %286 = shalt.err (!%p283_p1)
}
 0x185   :  { %219 = dma.vmem_to_hbm [thread:$0]  %s217_s28, 16, %s478_s7, [#allocation5]  }
 0x186   :  { %287 = dma.done.wait [#allocation3], 1792  }
 0x187   :  { %288 = vsyncadd [#allocation3], 4294965504 }
 0x188   :  { %289 = dma.done.wait [#allocation5], 16  }
 0x189   :  { %290 = vsyncadd [#allocation5], 4294967280 }
 0x18a   :  { %226 = vsyncpa [#allocation3], 1 }
 0x18b   :  { %227 = vsyncpa [#allocation5], 1 }

</bundles_post_ra>
